<compile_context>
chip_gen: v7x
topology: tpu7x:2x2x1
jax: 0.10.0
libtpu: 0.0.40
codegen_flags: <defaults>
</compile_context>

<pallas_src>
import functools

import jax
import jax.numpy as jnp
from jax import lax
from jax.experimental import pallas as pl
from jax.experimental.pallas import tpu as pltpu


def _fused_kernel(xf_ref, wb_ref, cbt_ref, wh_ref, bh_ref, out_ref, xcat_ref,
                  *, KH, H):
    """One grid step == one batch tile of Bb images.

    xf_ref  : (Bb, Hp, Wp*Cin)    bf16  SAME-padded images, (w, cin) on lanes
    wb_ref  : (KH*Wp*Cin, W*F)    bf16  banded conv weight, row taps folded on K
    cbt_ref : (1, W*F)            f32   conv bias tiled over w
    wh_ref  : (W*F, 2*NC)         f32   [head1|head2] weights, 1/(H*W) folded in
    bh_ref  : (1, 2*NC)           f32   [head1|head2] bias
    out_ref : (Bb, 2*NC)          f32
    xcat_ref: (Bb*H, KH*Wp*Cin)   bf16  VMEM scratch: folded conv LHS
    """
    Bb, Hp, WpC = xf_ref.shape
    WF = wb_ref.shape[1]

    # Fold the KH row taps into one deep contraction: build the LHS in VMEM from
    # KH row-shifted views of the padded image (no im2col in HBM).  Static
    # unroll, KH = 3.
    for kh in range(KH):
        xcat_ref[:, kh * WpC:(kh + 1) * WpC] = (
            xf_ref[:, kh:kh + H, :].reshape(Bb * H, WpC))

    # Single conv matmul: K = KH*Wp*Cin (= 216 here) -> one pass on a 256-deep
    # MXU; f32 accumulation directly from the dot (no zero-init + add).
    acc = jnp.dot(xcat_ref[...], wb_ref[...],
                  preferred_element_type=jnp.float32)          # (Bb*H, W*F)

    # Bias + ReLU at full spatial resolution.
    y = jnp.maximum(acc + cbt_ref[...], 0.0)                   # f32

    # Global average pool: sublane-axis sum over H on the VPU; the 1/(H*W)
    # normalizer lives in wh.  (No O(Bb^2) pooling matmul.)
    pooled = jnp.sum(y.reshape(Bb, H, WF), axis=1)             # (Bb, W*F) f32

    # Fused two-head projection + bias; single (Bb, 2*NC) store.
    out_ref[...] = (jnp.dot(pooled, wh_ref[...],
                            preferred_element_type=jnp.float32) + bh_ref[...])


def prepare_params(conv_w_hwio, conv_b, w1_t, b1, w2_t, b2, image_hw):
    """Precompute kernel-side weight operands ONCE per weight set (hoisted out
    of the per-call forward path)."""
    H, W = image_hw
    KH, KW, Cin, F = conv_w_hwio.shape
    NC = w1_t.shape[1]
    assert w2_t.shape[1] == NC  # torch.cat along dim=2 requires equal class counts
    pw = KW // 2
    Wp = W + 2 * pw

    # Banded conv weight with the row taps stacked on the contraction axis:
    #   wband[kh*Wp*Cin + wp*Cin + c, w*F + f] = cw[kh, wp - w, c, f], 0<=wp-w<KW
    cw = conv_w_hwio.astype(jnp.float32)
    j = jnp.arange(Wp * Cin)
    wp_idx, c_idx = j // Cin, j % Cin
    kw_rel = wp_idx[:, None] - jnp.arange(W)[None, :]                 # (Wp*Cin, W)
    valid = (kw_rel >= 0) & (kw_rel < KW)
    band = cw[:, jnp.clip(kw_rel, 0, KW - 1), c_idx[:, None], :]      # (KH,WpC,W,F)
    wband = jnp.where(valid[None, :, :, None], band, 0.0)
    wband = wband.reshape(KH * Wp * Cin, W * F).astype(jnp.bfloat16)

    cbt = jnp.tile(conv_b.astype(jnp.float32), W).reshape(1, W * F)

    # Fused heads, tiled over w, with the 1/(H*W) GAP normalizer folded in
    # (exact for power-of-two H, W).
    whead = jnp.concatenate([w1_t, w2_t], axis=1).astype(jnp.float32)  # (F, 2*NC)
    wh = jnp.tile(whead / (H * W), (W, 1))                             # (W*F, 2*NC)
    bh = jnp.concatenate([b1, b2]).reshape(1, 2 * NC).astype(jnp.float32)

    return {"wband": wband, "cbt": cbt, "wh": wh, "bh": bh, "KH": KH, "KW": KW}


@functools.partial(jax.jit, static_argnames=("kh_taps", "kw_taps", "batch_block"))
def _forward_impl(x_nchw, wband, cbt, wh, bh, *, kh_taps, kw_taps, batch_block):
    B, Cin, H, W = x_nchw.shape
    NC2 = wh.shape[1]
    ph, pw = kh_taps // 2, kw_taps // 2
    Wp = W + 2 * pw
    # Pad the row axis to a multiple of 8 so the row-shifted tap slices and the
    # (Bb, H) -> Bb*H collapse stay sublane-friendly.
    Hp = -(-(H + 2 * ph) // 8) * 8

    # ---- batch tiling ----
    Bb = min(batch_block, B)
    if B >= 32:
        Bb = min(Bb, -(-B // 2))   # keep >=2 grid steps: both v7x TensorCores busy
    if Bb < B:
        Bb = -(-Bb // 8) * 8       # sublane-aligned output tile when batch is split
    G = -(-B // Bb)                # cdiv
    Bpad = G * Bb

    # Image: NCHW -> NHWC, bf16, SAME pad (+ alignment rows), flatten (w, cin)
    # onto lanes.  This is the only per-call host-side prep.
    x = jnp.transpose(x_nchw, (0, 2, 3, 1)).astype(jnp.bfloat16)
    xp = jnp.pad(x, ((0, Bpad - B), (ph, Hp - H - ph), (pw, pw), (0, 0)))
    xf = xp.reshape(Bpad, Hp, Wp * Cin)

    kernel = functools.partial(_fused_kernel, KH=kh_taps, H=H)
    out = pl.pallas_call(
        kernel,
        out_shape=jax.ShapeDtypeStruct((Bpad, NC2), jnp.float32),
        grid_spec=pltpu.PrefetchScalarGridSpec(
            num_scalar_prefetch=0,
            grid=(G,),
            in_specs=[
                pl.BlockSpec((Bb, Hp, Wp * Cin), lambda g: (g, 0, 0)),
                pl.BlockSpec(wband.shape, lambda g: (0, 0)),
                pl.BlockSpec(cbt.shape, lambda g: (0, 0)),
                pl.BlockSpec(wh.shape, lambda g: (0, 0)),
                pl.BlockSpec(bh.shape, lambda g: (0, 0)),
            ],
            out_specs=pl.BlockSpec((Bb, NC2), lambda g: (g, 0)),
            scratch_shapes=[
                pltpu.VMEM((Bb * H, kh_taps * Wp * Cin), jnp.bfloat16)],
        ),
        compiler_params=pltpu.CompilerParams(
            dimension_semantics=("parallel",),
            vmem_limit_bytes=32 * 1024 * 1024),
    )(xf, wband, cbt, wh, bh)

    out = out[:B]                       # drop batch padding
    NC = NC2 // 2
    # (B, 2*NC) -> (B, NC, 2) == torch.cat((fc1(x).unsqueeze(2), fc2(x).unsqueeze(2)), 2)
    return jnp.stack([out[:, :NC], out[:, NC:]], axis=2)


def two_task_forward(x_nchw, params, *, batch_block=128):
    """Returns scores of shape (B, num_classes, 2), matching the PyTorch module."""
    return _forward_impl(x_nchw, params["wband"], params["cbt"], params["wh"],
                         params["bh"], kh_taps=params["KH"],
                         kw_taps=params["KW"], batch_block=batch_block)


def _reference(x_nchw, conv_w_hwio, conv_b, w1_t, b1, w2_t, b2):
    x = jnp.transpose(x_nchw, (0, 2, 3, 1)).astype(jnp.float32)
    y = lax.conv_general_dilated(
        x, conv_w_hwio.astype(jnp.float32), window_strides=(1, 1), padding="SAME",
        dimension_numbers=("NHWC", "HWIO", "NHWC"),
        precision=lax.Precision.HIGHEST)
    y = jnp.maximum(y + conv_b.reshape(1, 1, 1, -1), 0.0)
    feat = jnp.mean(y, axis=(1, 2))                             # (B, F)
    s1 = jnp.dot(feat, w1_t, precision=lax.Precision.HIGHEST) + b1
    s2 = jnp.dot(feat, w2_t, precision=lax.Precision.HIGHEST) + b2
    return jnp.stack([s1, s2], axis=2)                          # (B, NC, 2)


def _xavier_uniform(key, fan_in, fan_out):
    bound = (6.0 / (fan_in + fan_out)) ** 0.5
    # torch Linear weight is (out, in); return pre-transposed (in, out)
    w = jax.random.uniform(key, (fan_out, fan_in), jnp.float32, -bound, bound)
    return w.T


if __name__ == "__main__":
    B, Cin, H, W = 2, 4, 16, 16
    feature_size = 32
    num_classes = 8        # num_classes1 == num_classes2 (required by the cat)

    key = jax.random.PRNGKey(0)
    kx, kcw, kcb, kw1, kb1, kw2, kb2 = jax.random.split(key, 7)

    x_nchw = jax.random.normal(kx, (B, Cin, H, W), jnp.float32)

    # synthetic pretrained-body conv: HWIO (3, 3, Cin, F)
    conv_w = 0.1 * jax.random.normal(kcw, (3, 3, Cin, feature_size), jnp.float32)
    conv_b = 0.1 * jax.random.normal(kcb, (feature_size,), jnp.float32)

    # fc heads: xavier-uniform weights, torch-default uniform bias
    w1_t = _xavier_uniform(kw1, feature_size, num_classes)   # (F, NC)
    w2_t = _xavier_uniform(kw2, feature_size, num_classes)
    bb = 1.0 / (feature_size ** 0.5)
    b1 = jax.random.uniform(kb1, (num_classes,), jnp.float32, -bb, bb)
    b2 = jax.random.uniform(kb2, (num_classes,), jnp.float32, -bb, bb)

    # Weight prep happens once per weight set, outside the per-call forward.
    params = prepare_params(conv_w, conv_b, w1_t, b1, w2_t, b2, (H, W))

    scores = two_task_forward(x_nchw, params)
    scores = jax.block_until_ready(scores)

    # The kernel intentionally rounds image + conv weights to bf16 (f32 accum),
    # so compare against an f32 reference fed the same bf16-rounded values.
    x_r = x_nchw.astype(jnp.bfloat16).astype(jnp.float32)
    cw_r = conv_w.astype(jnp.bfloat16).astype(jnp.float32)
    ref = _reference(x_r, cw_r, conv_b, w1_t, b1, w2_t, b2)

    assert scores.shape == (B, num_classes, 2), scores.shape
    assert jnp.allclose(scores, ref, atol=1e-4, rtol=1e-4), (
        float(jnp.max(jnp.abs(scores - ref))))

    print("KERNEL_OK")
</pallas_src>

<mosaic_0001>
module attributes {stable_mosaic.version = 11 : i64} {
  func.func @_fused_kernel(%arg0: i32, %arg1: memref<2x24x72xbf16, #tpu.memory_space<vmem>>, %arg2: memref<216x512xbf16, #tpu.memory_space<vmem>>, %arg3: memref<1x512xf32, #tpu.memory_space<vmem>>, %arg4: memref<512x16xf32, #tpu.memory_space<vmem>>, %arg5: memref<1x16xf32, #tpu.memory_space<vmem>>, %arg6: memref<2x16xf32, #tpu.memory_space<vmem>>, %arg7: memref<32x216xbf16, #tpu.memory_space<vmem>>) attributes {dimension_semantics = [#tpu.dimension_semantics<parallel>], iteration_bounds = array<i64: 1>, scalar_prefetch = 0 : i64, scratch_operands = 1 : i64, tpu.core_type = #tpu.core_type<tc>, window_params = [{transform_indices = @transform_0, window_bounds = array<i64: 2, 24, 72>}, {pipeline_mode = #tpu.pipeline_mode<synchronous>, transform_indices = @transform_1, window_bounds = array<i64: 216, 512>}, {pipeline_mode = #tpu.pipeline_mode<synchronous>, transform_indices = @transform_2, window_bounds = array<i64: 1, 512>}, {pipeline_mode = #tpu.pipeline_mode<synchronous>, transform_indices = @transform_3, window_bounds = array<i64: 512, 16>}, {pipeline_mode = #tpu.pipeline_mode<synchronous>, transform_indices = @transform_4, window_bounds = array<i64: 1, 16>}, {transform_indices = @transform_5, window_bounds = array<i64: 2, 16>}]} {
    %c0 = arith.constant 0 : index
    %c0_0 = arith.constant 0 : index
    %c0_1 = arith.constant 0 : index
    %0 = vector.load %arg1[%c0, %c0_0, %c0_1] : memref<2x24x72xbf16, #tpu.memory_space<vmem>>, vector<2x16x72xbf16>
    %1 = vector.shape_cast %0 : vector<2x16x72xbf16> to vector<32x72xbf16>
    %c0_2 = arith.constant 0 : index
    %c0_3 = arith.constant 0 : index
    %2 = vector.load %arg7[%c0_2, %c0_3] : memref<32x216xbf16, #tpu.memory_space<vmem>>, vector<32x72xbf16>
    tpu.vector_store %arg7[%c0_2, %c0_3], %1 {strides = array<i32>} : memref<32x216xbf16, #tpu.memory_space<vmem>>, vector<32x72xbf16>,
    %c0_4 = arith.constant 0 : index
    %c1 = arith.constant 1 : index
    %c0_5 = arith.constant 0 : index
    %3 = vector.load %arg1[%c0_4, %c1, %c0_5] : memref<2x24x72xbf16, #tpu.memory_space<vmem>>, vector<2x16x72xbf16>
    %4 = vector.shape_cast %3 : vector<2x16x72xbf16> to vector<32x72xbf16>
    %c0_6 = arith.constant 0 : index
    %c72 = arith.constant 72 : index
    %5 = vector.load %arg7[%c0_6, %c72] : memref<32x216xbf16, #tpu.memory_space<vmem>>, vector<32x72xbf16>
    tpu.vector_store %arg7[%c0_6, %c72], %4 {strides = array<i32>} : memref<32x216xbf16, #tpu.memory_space<vmem>>, vector<32x72xbf16>,
    %c0_7 = arith.constant 0 : index
    %c2 = arith.constant 2 : index
    %c0_8 = arith.constant 0 : index
    %6 = vector.load %arg1[%c0_7, %c2, %c0_8] : memref<2x24x72xbf16, #tpu.memory_space<vmem>>, vector<2x16x72xbf16>
    %7 = vector.shape_cast %6 : vector<2x16x72xbf16> to vector<32x72xbf16>
    %c0_9 = arith.constant 0 : index
    %c144 = arith.constant 144 : index
    %8 = vector.load %arg7[%c0_9, %c144] : memref<32x216xbf16, #tpu.memory_space<vmem>>, vector<32x72xbf16>
    tpu.vector_store %arg7[%c0_9, %c144], %7 {strides = array<i32>} : memref<32x216xbf16, #tpu.memory_space<vmem>>, vector<32x72xbf16>,
    %c0_10 = arith.constant 0 : index
    %c0_11 = arith.constant 0 : index
    %9 = vector.load %arg7[%c0_10, %c0_11] : memref<32x216xbf16, #tpu.memory_space<vmem>>, vector<32x216xbf16>
    %c0_12 = arith.constant 0 : index
    %c0_13 = arith.constant 0 : index
    %10 = vector.load %arg2[%c0_12, %c0_13] : memref<216x512xbf16, #tpu.memory_space<vmem>>, vector<216x512xbf16>
    %cst = arith.constant dense<0.000000e+00> : vector<32x512xf32>
    %11 = tpu.matmul %9, %10, %cst {dimension_numbers = #tpu.dot_dimension_numbers<[1], [0], [0], [1], [0, 0, 1, 1], [], []>} : vector<32x216xbf16>, vector<216x512xbf16>, vector<32x512xf32> -> vector<32x512xf32>
    %c0_14 = arith.constant 0 : index
    %c0_15 = arith.constant 0 : index
    %12 = vector.load %arg3[%c0_14, %c0_15] : memref<1x512xf32, #tpu.memory_space<vmem>>, vector<1x512xf32>
    %13 = vector.broadcast %12 : vector<1x512xf32> to vector<32x512xf32>
    %14 = arith.addf %11, %13 : vector<32x512xf32>
    %cst_16 = arith.constant 0.000000e+00 : f32
    %15 = vector.broadcast %cst_16 : f32 to vector<32x512xf32>
    %16 = arith.maximumf %14, %15 : vector<32x512xf32>
    %17 = vector.shape_cast %16 : vector<32x512xf32> to vector<2x16x512xf32>
    %cst_17 = arith.constant dense<0.000000e+00> : vector<2x512xf32>
    %18 = vector.multi_reduction <add>, %17, %cst_17 [1] : vector<2x16x512xf32> to vector<2x512xf32>
    %c0_18 = arith.constant 0 : index
    %c0_19 = arith.constant 0 : index
    %19 = vector.load %arg4[%c0_18, %c0_19] : memref<512x16xf32, #tpu.memory_space<vmem>>, vector<512x16xf32>
    %cst_20 = arith.constant dense<0.000000e+00> : vector<2x16xf32>
    %20 = tpu.matmul %18, %19, %cst_20 {dimension_numbers = #tpu.dot_dimension_numbers<[1], [0], [0], [1], [0, 0, 1, 1], [], []>} : vector<2x512xf32>, vector<512x16xf32>, vector<2x16xf32> -> vector<2x16xf32>
    %c0_21 = arith.constant 0 : index
    %c0_22 = arith.constant 0 : index
    %21 = vector.load %arg5[%c0_21, %c0_22] : memref<1x16xf32, #tpu.memory_space<vmem>>, vector<1x16xf32>
    %22 = vector.broadcast %21 : vector<1x16xf32> to vector<2x16xf32>
    %23 = arith.addf %20, %22 : vector<2x16xf32>
    %c0_23 = arith.constant 0 : index
    %c0_24 = arith.constant 0 : index
    %24 = vector.load %arg6[%c0_23, %c0_24] : memref<2x16xf32, #tpu.memory_space<vmem>>, vector<2x16xf32>
    tpu.vector_store %arg6[%c0_23, %c0_24], %23 {strides = array<i32>} : memref<2x16xf32, #tpu.memory_space<vmem>>, vector<2x16xf32>,
    return
  }
  func.func @transform_0(%arg0: i32) -> (i32, i32, i32) {
    %c0_i32 = arith.constant 0 : i32
    %c0_i32_0 = arith.constant 0 : i32
    %c0_i32_1 = arith.constant 0 : i32
    return %arg0, %c0_i32, %c0_i32_0 : i32, i32, i32
  }
  func.func @transform_1(%arg0: i32) -> (i32, i32) {
    %c0_i32 = arith.constant 0 : i32
    %c0_i32_0 = arith.constant 0 : i32
    %c0_i32_1 = arith.constant 0 : i32
    return %c0_i32, %c0_i32_0 : i32, i32
  }
  func.func @transform_2(%arg0: i32) -> (i32, i32) {
    %c0_i32 = arith.constant 0 : i32
    %c0_i32_0 = arith.constant 0 : i32
    %c0_i32_1 = arith.constant 0 : i32
    return %c0_i32, %c0_i32_0 : i32, i32
  }
  func.func @transform_3(%arg0: i32) -> (i32, i32) {
    %c0_i32 = arith.constant 0 : i32
    %c0_i32_0 = arith.constant 0 : i32
    %c0_i32_1 = arith.constant 0 : i32
    return %c0_i32, %c0_i32_0 : i32, i32
  }
  func.func @transform_4(%arg0: i32) -> (i32, i32) {
    %c0_i32 = arith.constant 0 : i32
    %c0_i32_0 = arith.constant 0 : i32
    %c0_i32_1 = arith.constant 0 : i32
    return %c0_i32, %c0_i32_0 : i32, i32
  }
  func.func @transform_5(%arg0: i32) -> (i32, i32) {
    %c0_i32 = arith.constant 0 : i32
    %c0_i32_0 = arith.constant 0 : i32
    return %arg0, %c0_i32 : i32, i32
  }
}

</mosaic_0001>

<bundles_post_ra>
// kernel: _forward_impl.1
= control target key start
LH: loop header
LB: loop body
LE: loop exit
PB: predicated region body
PF: predicated region fallthrough
CT: control target
= control target key end

     0   :  { %vm46_vm0 = vsmask.f32 3328  ;;  %vm47_vm1 = vsmask.f32 7440  ;;  %vm127_vm2 = vcmask 1042432   ;;  %vm128_vm3 = vcmask 1046532   ;;  %s1698_s0 = inlined_call_operand.vmem [shape: bf16[2,24,72], index: 0, kind: input, shape index: {}]   ;;  %s1699_s1 = inlined_call_operand.vmem [shape: bf16[216,512], index: 1, kind: input, shape index: {}]   ;;  %s1700_s3 = inlined_call_operand.vmem [shape: f32[512,16], index: 3, kind: input, shape index: {}]   ;;  %s1701_s2 = inlined_call_operand.vmem [shape: f32[1,512], index: 2, kind: input, shape index: {}]   ;;  %s1702_s4 = inlined_call_operand.vmem [shape: f32[1,16], index: 4, kind: input, shape index: {}]   ;;  %s1703_s5 = inlined_call_operand.vmem [shape: f32[2,16], index: 5, kind: output, shape index: {}]  }
   0x1   :  { %v40_v0 = vld [vmem:[%s1698_s0] sm:$0xf]  ;;  %v41_v1 = vld [vmem:[%s1698_s0 + $0x4] sm:$0xf]  ;;  %v42_v2 = vld [vmem:[%s1698_s0 + $0x8] sm:$0x1] }
   0x2   :  { %v50_v3 = vshrl.u32 %v40_v0, 16  ;;  %v53_v4 = vshll.u32 %v40_v0, 16  ;;  %v59_v5 = vshll.u32 %v41_v1, 16  ;;  %v63_v6 = vshrl.u32 %v41_v1, 16  ;;  %v115_v7 = vld [vmem:[%s1698_s0] sm:$0xe]  ;;  %vm1286_vm4 = vmor %vm127_vm2, %vm128_vm3 }
   0x3   :  { %v69_v8 = vshll.u32 %v42_v2, 16  ;;  %v116_v9 = vld [vmem:[%s1698_s0 + $0x4] sm:$0xf]  ;;  %v117_v10 = vld [vmem:[%s1698_s0 + $0x8] sm:$0x1]  ;;  %v945_v16 = vrot.slane %v115_v7, 9  ;;  %vm1298_vm5 = vmor %vm46_vm0, %vm47_vm1 }
   0x4   :  { %v52_v11 = vrot.slane %v50_v3, 4  ;;  %v55_v12 = vrot.slane %v53_v4, 5  ;;  %v61_v13 = vrot.slane %v59_v5, 5  ;;  %v65_v14 = vrot.slane %v63_v6, 4  ;;  %v43_v19 = vld [vmem:[%s1698_s0 + $0xc] sm:$0xf] }
   0x5   :  { %v71_v15 = vrot.slane %v69_v8, 5  ;;  %v132_v17 = vrot.slane %v116_v9, 5  ;;  %v135_v18 = vrot.slane %v117_v10, 5  ;;  %v44_v23 = vld [vmem:[%s1698_s0 + $0x10] sm:$0xf]  ;;  %v74_v25 = vshrl.u32 %v43_v19, 16 }
   0x6   :  { %v56_v20 = vor.u32 %v55_v12, %v52_v11  ;;  %v66_v21 = vor.u32 %v65_v14, %v61_v13  ;;  %v45_v24 = vld [vmem:[%s1698_s0 + $0x14] sm:$0x1]  ;;  %v77_v26 = vshll.u32 %v43_v19, 16  ;;  %v83_v29 = vshll.u32 %v44_v23, 16  ;;  %v118_v31 = vld [vmem:[%s1698_s0 + $0xc] sm:$0xe] }
   0x7   :  { %v134_v28 = vrot.slane %v132_v17, 4  ;;  %v87_v30 = vshrl.u32 %v44_v23, 16  ;;  %v76_v34 = vrot.slane %v74_v25, 4  ;;  %v119_v36 = vld [vmem:[%s1698_s0 + $0x10] sm:$0xf]  ;;  %v133_v37 = vsel %vm1286_vm4, %v945_v16, %v132_v17  ;;  %s1232_s25 = smov 72  }
   0x8   :  { %v57_v32 = vrot.slane %v56_v20, 4  ;;  %v67_v33 = vrot.slane %v66_v21, 4  ;;  %v79_v35 = vrot.slane %v77_v26, 5  ;;  %v85_v38 = vrot.slane %v83_v29, 5  ;;  %v120_v41 = vld [vmem:[%s1698_s0 + $0x14] sm:$0x1] }
   0x9   :  { %v89_v39 = vrot.slane %v87_v30, 4  ;;  %v93_v40 = vshll.u32 %v45_v24, 16  ;;  %v136_v44 = vsel %vm1286_vm4, %v134_v28, %v135_v18  ;;  %v1148_v46 = vld [vmem:[%s1699_s1 + $0x4] ss:$16 sps:$4 sm:$0xff]   ;;  %v1150_v47 = vld [vmem:[%s1699_s1 + $0xc] ss:$16 sps:$4 sm:$0xff]  }
   0xa   :  { %v62_v42 = vsel %vm1298_vm5, %v57_v32, %v61_v13  ;;  %v72_v43 = vsel %vm1298_vm5, %v67_v33, %v71_v15  ;;  %v80_v45 = vor.u32 %v79_v35, %v76_v34  ;;  %v946_v51 = vrot.slane %v118_v31, 9  ;;  %v1152_v52 = vld [vmem:[%s1699_s1] ss:$16 sps:$4 sm:$0xff]   ;;  %v1153_v53 = vld [vmem:[%s1699_s1 + $0x8] ss:$16 sps:$4 sm:$0xff]   ;;  %529 = vmatprep.subr.bf16.mxu0 %v1148_v46  ;;  %582 = vmatprep.subr.bf16.mxu1 %v1150_v47  ;;  %s1233_s13 = smov 16  }
   0xb   :  { %v943_v48 = vcombine.low %v62_v42, %v72_v43  ;;  %v90_v49 = vor.u32 %v89_v39, %v85_v38  ;;  %v95_v50 = vrot.slane %v93_v40, 5  ;;  %v139_v55 = vrot.slane %v119_v36, 5  ;;  %530 = vmatpush1.bf16.msra.mxu0 %v1152_v52  ;;  %v1154_v59 = vld [vmem:[%s1699_s1 + $0x24] ss:$16 sps:$4 sm:$0xff]   ;;  %v1156_v60 = vld [vmem:[%s1699_s1 + $0x2c] ss:$16 sps:$4 sm:$0xff]   ;;  %583 = vmatpush1.bf16.msra.mxu1 %v1153_v53 }
   0xc   :  { %v81_v54 = vrot.slane %v80_v45, 4  ;;  %v142_v56 = vrot.slane %v120_v41, 5  ;;  %v947_v57 = vcombine.low %v133_v37, %v136_v44  ;;  %v1158_v63 = vld [vmem:[%s1699_s1 + $0x20] ss:$16 sps:$4 sm:$0xff]   ;;  %v1159_v0 = vld [vmem:[%s1699_s1 + $0x28] ss:$16 sps:$4 sm:$0xff]   ;;  %531 = vmatprep.subr.bf16.mxu0 %v1154_v59  ;;  %584 = vmatprep.subr.bf16.mxu1 %v1156_v60 }
   0xd   :  { %103 = vrot.lane.b32.xlu0 %v943_v48, %s1232_s25  ;;  %v91_v58 = vrot.slane %v90_v49, 4  ;;  %v141_v62 = vrot.slane %v139_v55, 4  ;;  %v140_v2 = vsel %vm1286_vm4, %v946_v51, %v139_v55  ;;  %v1160_v3 = vld [vmem:[%s1699_s1 + $0x44] ss:$16 sps:$4 sm:$0xff]   ;;  %v1162_v6 = vld [vmem:[%s1699_s1 + $0x4c] ss:$16 sps:$4 sm:$0xff]  }
   0xe   :  { %v86_v61 = vsel %vm1298_vm5, %v81_v54, %v85_v38  ;;  %v1164_v7 = vld [vmem:[%s1699_s1 + $0x40] ss:$16 sps:$4 sm:$0xff]   ;;  %v1165_v9 = vld [vmem:[%s1699_s1 + $0x48] ss:$16 sps:$4 sm:$0xff]   ;;  %v1166_v10 = vld [vmem:[%s1699_s1 + $0x64] ss:$16 sps:$4 sm:$0xff]  }
   0xf   :  { %v96_v1 = vsel %vm1298_vm5, %v91_v58, %v95_v50  ;;  %v143_v5 = vsel %vm1286_vm4, %v141_v62, %v142_v56  ;;  %532 = vmatpush1.bf16.msra.mxu0 %v1158_v63  ;;  %585 = vmatpush1.bf16.msra.mxu1 %v1159_v0  ;;  %v1168_v11 = vld [vmem:[%s1699_s1 + $0x6c] ss:$16 sps:$4 sm:$0xff]   ;;  %v1170_v12 = vld [vmem:[%s1699_s1 + $0x60] ss:$16 sps:$4 sm:$0xff]   ;;  %v1171_v13 = vld [vmem:[%s1699_s1 + $0x68] ss:$16 sps:$4 sm:$0xff]  }
  0x10   :  { %v944_v4 = vcombine.low %v86_v61, %v96_v1  ;;  %v948_v8 = vcombine.low %v140_v2, %v143_v5  ;;  %533 = vmatprep.subr.bf16.mxu0 %v1160_v3  ;;  %586 = vmatprep.subr.bf16.mxu1 %v1162_v6  ;;  %v1172_v14 = vld [vmem:[%s1699_s1 + $0x84] ss:$16 sps:$4 sm:$0xff]   ;;  %v1174_v15 = vld [vmem:[%s1699_s1 + $0x8c] ss:$16 sps:$4 sm:$0xff]   ;;  %v1176_v16 = vld [vmem:[%s1699_s1 + $0x80] ss:$16 sps:$4 sm:$0xff]  }
  0x11   :  { %150 = vrot.lane.b32.xlu0 %v947_v57, %s1233_s13  ;;  %v1177_v17 = vld [vmem:[%s1699_s1 + $0x88] ss:$16 sps:$4 sm:$0xff]   ;;  %v1178_v18 = vld [vmem:[%s1699_s1 + $0xa4] ss:$16 sps:$4 sm:$0xff]   ;;  %v1180_v19 = vld [vmem:[%s1699_s1 + $0xac] ss:$16 sps:$4 sm:$0xff]  }
  0x12   :  { %105 = vrot.lane.b32.xlu1 %v944_v4, %s1232_s25  ;;  %v1182_v20 = vld [vmem:[%s1699_s1 + $0xa0] ss:$16 sps:$4 sm:$0xff]   ;;  %v1183_v21 = vld [vmem:[%s1699_s1 + $0xa8] ss:$16 sps:$4 sm:$0xff]   ;;  %v1184_v22 = vld [vmem:[%s1699_s1 + $0xc4] ss:$16 sps:$4 sm:$0xff]  }
  0x13   :  { %534 = vmatpush1.bf16.msra.mxu0 %v1164_v7  ;;  %587 = vmatpush1.bf16.msra.mxu1 %v1165_v9  ;;  %v1186_v23 = vld [vmem:[%s1699_s1 + $0xcc] ss:$16 sps:$4 sm:$0xff]   ;;  %v1188_v24 = vld [vmem:[%s1699_s1 + $0xc0] ss:$16 sps:$4 sm:$0xff]   ;;  %v1189_v25 = vld [vmem:[%s1699_s1 + $0xc8] ss:$16 sps:$4 sm:$0xff]  }
  0x14   :  { %535 = vmatprep.subr.bf16.mxu0 %v1166_v10  ;;  %588 = vmatprep.subr.bf16.mxu1 %v1168_v11  ;;  %v1190_v26 = vld [vmem:[%s1699_s1 + $0xe4] ss:$16 sps:$4 sm:$0xff]   ;;  %v1192_v27 = vld [vmem:[%s1699_s1 + $0xec] ss:$16 sps:$4 sm:$0xff]   ;;  %v1194_v28 = vld [vmem:[%s1699_s1 + $0xe0] ss:$16 sps:$4 sm:$0xff]  }
  0x15   :  { %v1195_v29 = vld [vmem:[%s1699_s1 + $0xe8] ss:$16 sps:$4 sm:$0xff]   ;;  %vm37_vm6 = vcmask 588800   ;;  %v1196_v30 = vld [vmem:[%s1699_s1 + $0x104] ss:$16 sps:$4 sm:$0xff]   ;;  %v1227_v38 = vld [vmem:[%s1698_s0 + $0xc] sm:$0xff]  }
  0x16   :  { %152 = vrot.lane.b32.xlu1 %v948_v8, %s1233_s13  ;;  %v1198_v31 = vld [vmem:[%s1699_s1 + $0x10c] ss:$16 sps:$4 sm:$0xff]   ;;  %v1214_v32 = vld [vmem:[%s1698_s0] sm:$0xff]   ;;  %v1201_v34 = vld [vmem:[%s1699_s1 + $0x108] ss:$16 sps:$4 sm:$0xff]   ;;  %39 = vst.msk [vmem:[#allocation2 + $0x10] sm:$0xff] %vm37_vm6, %v1227_v38 }
  0x17   :  { %536 = vmatpush1.bf16.msra.mxu0 %v1170_v12  ;;  %589 = vmatpush1.bf16.msra.mxu1 %v1171_v13  ;;  %v1200_v33 = vld [vmem:[%s1699_s1 + $0x100] ss:$16 sps:$4 sm:$0xff]   ;;  %38 = vst.msk [vmem:[#allocation2] sm:$0xff] %vm37_vm6, %v1214_v32  ;;  %v1202_v35 = vld [vmem:[%s1699_s1 + $0x124] ss:$16 sps:$4 sm:$0xff]   ;;  %v216_v51 = vld [vmem:[%s1699_s1 + $0x1a8] sm:$0xff] }
  0x18   :  { %537 = vmatprep.subr.bf16.mxu0 %v1172_v14  ;;  %590 = vmatprep.subr.bf16.mxu1 %v1174_v15  ;;  %v1204_v36 = vld [vmem:[%s1699_s1 + $0x12c] ss:$16 sps:$4 sm:$0xff]   ;;  %v1206_v37 = vld [vmem:[%s1699_s1 + $0x120] ss:$16 sps:$4 sm:$0xff]   ;;  %v1207_v39 = vld [vmem:[%s1699_s1 + $0x128] ss:$16 sps:$4 sm:$0xff]   ;;  %v1004_v56 = vcombine.high %v216_v51, %v216_v51  ;;  %v1003_v57 = vcombine.low %v216_v51, %v216_v51 }
  0x19   :  { %v1208_v40 = vld [vmem:[%s1699_s1 + $0x144] ss:$16 sps:$4 sm:$0xff]   ;;  %v1210_v41 = vld [vmem:[%s1699_s1 + $0x14c] ss:$16 sps:$4 sm:$0xff]   ;;  %v1212_v42 = vld [vmem:[%s1699_s1 + $0x140] ss:$16 sps:$4 sm:$0xff]  }
  0x1a   :  { %v1213_v43 = vld [vmem:[%s1699_s1 + $0x148] ss:$16 sps:$4 sm:$0xff]   ;;  %v1215_v44 = vld [vmem:[%s1699_s1 + $0x164] ss:$16 sps:$4 sm:$0xff]   ;;  %v1217_v45 = vld [vmem:[%s1699_s1 + $0x16c] ss:$16 sps:$4 sm:$0xff]  }
  0x1b   :  { %538 = vmatpush1.bf16.msra.mxu0 %v1176_v16  ;;  %591 = vmatpush1.bf16.msra.mxu1 %v1177_v17  ;;  %v1219_v46 = vld [vmem:[%s1699_s1 + $0x160] ss:$16 sps:$4 sm:$0xff]   ;;  %v1220_v47 = vld [vmem:[%s1699_s1 + $0x168] ss:$16 sps:$4 sm:$0xff]   ;;  %v1221_v48 = vld [vmem:[%s1699_s1 + $0x184] ss:$16 sps:$4 sm:$0xff]  }
  0x1c   :  { %539 = vmatprep.subr.bf16.mxu0 %v1178_v18  ;;  %592 = vmatprep.subr.bf16.mxu1 %v1180_v19  ;;  %v1223_v49 = vld [vmem:[%s1699_s1 + $0x18c] ss:$16 sps:$4 sm:$0xff]   ;;  %v215_v50 = vld [vmem:[%s1699_s1 + $0x1a0] sm:$0xff]  ;;  %v1226_v53 = vld [vmem:[%s1699_s1 + $0x188] ss:$16 sps:$4 sm:$0xff]   ;;  %vm516_vm7 = vcmask 1043456  }
  0x1d   :  { %v1225_v52 = vld [vmem:[%s1699_s1 + $0x180] ss:$16 sps:$4 sm:$0xff]   ;;  %v1002_v54 = vcombine.high %v215_v50, %v215_v50  ;;  %v1001_v55 = vcombine.low %v215_v50, %v215_v50  ;;  %v524_v59 = vsel %vm516_vm7, %v1003_v57, 0  ;;  %vm109_vm8 = vcmask 1048128   ;;  %v724_v5 = vld [vmem:[%s1700_s3 + $0x88] sm:$0xff]  ;;  %v726_v17 = vld [vmem:[%s1700_s3 + $0x98] sm:$0xff] }
  0x1e   :  { %vm111_vm9 = vcmask 130048   ;;  %vm156_vm10 = vcmask 720000   ;;  %vm509_vm11 = vcmask 719872   ;;  %v723_v4 = vld [vmem:[%s1700_s3 + $0x80] sm:$0xff]  ;;  %v756_v8 = vld [vmem:[%s1700_s3 + $0x188] sm:$0xff]  ;;  %v725_v16 = vld [vmem:[%s1700_s3 + $0x90] sm:$0xff] }
  0x1f   :  { %540 = vmatpush1.bf16.msra.mxu0 %v1182_v20  ;;  %593 = vmatpush1.bf16.msra.mxu1 %v1183_v21  ;;  %v518_v58 = vsel %vm516_vm7, %v1001_v55, 0  ;;  %v755_v6 = vld [vmem:[%s1700_s3 + $0x180] sm:$0xff]  ;;  %v1082_v7 = vpack.c.bf16 %v724_v5, %v723_v4  ;;  %v708_v10 = vld [vmem:[%s1700_s3 + $0x8] sm:$0xff]  ;;  %v757_v18 = vld [vmem:[%s1700_s3 + $0x190] sm:$0xff]  ;;  %v1086_v19 = vpack.c.bf16 %v726_v17, %v725_v16  ;;  %vm786_vm12 = vcmask 1041409  }
  0x20   :  { %541 = vmatprep.subr.bf16.mxu0 %v1184_v22  ;;  %594 = vmatprep.subr.bf16.mxu1 %v1186_v23  ;;  %v707_v9 = vld [vmem:[%s1700_s3] sm:$0xff]  ;;  %v1114_v11 = vpack.c.bf16 %v756_v8, %v755_v6  ;;  %v740_v14 = vld [vmem:[%s1700_s3 + $0x108] sm:$0xff]  ;;  %v758_v20 = vld [vmem:[%s1700_s3 + $0x198] sm:$0xff]  ;;  %vm935_vm13 = vcmask 123904  }
  0x21   :  { %v1084_v12 = vpack.c.bf16 %v708_v10, %v707_v9  ;;  %v739_v13 = vld [vmem:[%s1700_s3 + $0x100] sm:$0xff]  ;;  %v709_v21 = vld [vmem:[%s1700_s3 + $0x10] sm:$0xff]  ;;  %v710_v22 = vld [vmem:[%s1700_s3 + $0x18] sm:$0xff]  ;;  %v1118_v23 = vpack.c.bf16 %v758_v20, %v757_v18 }
  0x22   :  { %v1116_v15 = vpack.c.bf16 %v740_v14, %v739_v13  ;;  %v760_v32 = vld [vmem:[%s1700_s3 + $0x1a8] sm:$0xff]  ;;  %v746_v50 = vld [vmem:[%s1700_s3 + $0x138] sm:$0xff]  ;;  %v715_v57 = vld [vmem:[%s1700_s3 + $0x40] sm:$0xff] }
  0x23   :  { %542 = vmatpush1.bf16.msra.mxu0 %v1188_v24  ;;  %595 = vmatpush1.bf16.msra.mxu1 %v1189_v25  ;;  %v1088_v24 = vpack.c.bf16 %v710_v22, %v709_v21  ;;  %v741_v25 = vld [vmem:[%s1700_s3 + $0x110] sm:$0xff]  ;;  %v744_v38 = vld [vmem:[%s1700_s3 + $0x128] sm:$0xff]  ;;  %v766_v4 = vld [vmem:[%s1700_s3 + $0x1d8] sm:$0xff] }
  0x24   :  { %543 = vmatprep.subr.bf16.mxu0 %v1190_v26  ;;  %596 = vmatprep.subr.bf16.mxu1 %v1192_v27  ;;  %v742_v26 = vld [vmem:[%s1700_s3 + $0x118] sm:$0xff]  ;;  %v717_v5 = vld [vmem:[%s1700_s3 + $0x50] sm:$0xff]  ;;  %v736_v13 = vld [vmem:[%s1700_s3 + $0xe8] sm:$0xff] }
  0x25   :  { %v1120_v27 = vpack.c.bf16 %v742_v26, %v741_v25  ;;  %v718_v6 = vld [vmem:[%s1700_s3 + $0x58] sm:$0xff]  ;;  %v749_v9 = vld [vmem:[%s1700_s3 + $0x150] sm:$0xff]  ;;  %v767_v14 = vld [vmem:[%s1700_s3 + $0x1e0] sm:$0xff] }
  0x26   :  { %v1104_v8 = vpack.c.bf16 %v718_v6, %v717_v5  ;;  %v750_v10 = vld [vmem:[%s1700_s3 + $0x158] sm:$0xff]  ;;  %v768_v16 = vld [vmem:[%s1700_s3 + $0x1e8] sm:$0xff]  ;;  %v719_v17 = vld [vmem:[%s1700_s3 + $0x60] sm:$0xff] }
  0x27   :  { %544 = vmatpush1.bf16.msra.mxu0 %v1194_v28  ;;  %597 = vmatpush1.bf16.msra.mxu1 %v1195_v29  ;;  %v727_v28 = vld [vmem:[%s1700_s3 + $0xa0] sm:$0xff]  ;;  %v728_v29 = vld [vmem:[%s1700_s3 + $0xa8] sm:$0xff]  ;;  %v738_v25 = vld [vmem:[%s1700_s3 + $0xf8] sm:$0xff] }
  0x28   :  { %545 = vmatprep.subr.bf16.mxu0 %v1196_v30  ;;  %598 = vmatprep.subr.bf16.mxu1 %v1198_v31  ;;  %v759_v30 = vld [vmem:[%s1700_s3 + $0x1a0] sm:$0xff]  ;;  %v1090_v31 = vpack.c.bf16 %v728_v29, %v727_v28  ;;  %v720_v18 = vld [vmem:[%s1700_s3 + $0x68] sm:$0xff]  ;;  %v769_v26 = vld [vmem:[%s1700_s3 + $0x1f0] sm:$0xff] }
  0x29   :  { %v1108_v20 = vpack.c.bf16 %v720_v18, %v719_v17  ;;  %v751_v21 = vld [vmem:[%s1700_s3 + $0x160] sm:$0xff]  ;;  %v752_v22 = vld [vmem:[%s1700_s3 + $0x168] sm:$0xff]  ;;  %v770_v28 = vld [vmem:[%s1700_s3 + $0x1f8] sm:$0xff] }
  0x2a   :  { %v721_v29 = vld [vmem:[%s1700_s3 + $0x70] sm:$0xff] }
  0x2b   :  { %546 = vmatpush1.bf16.msra.mxu0 %v1200_v33  ;;  %599 = vmatpush1.bf16.msra.mxu1 %v1201_v34  ;;  %v711_v33 = vld [vmem:[%s1700_s3 + $0x20] sm:$0xff]  ;;  %v712_v34 = vld [vmem:[%s1700_s3 + $0x28] sm:$0xff] }
  0x2c   :  { %547 = vmatprep.subr.bf16.mxu0 %v1202_v35  ;;  %600 = vmatprep.subr.bf16.mxu1 %v1204_v36  ;;  %v1122_v35 = vpack.c.bf16 %v760_v32, %v759_v30  ;;  %v1092_v36 = vpack.c.bf16 %v712_v34, %v711_v33  ;;  %v722_v30 = vld [vmem:[%s1700_s3 + $0x78] sm:$0xff]  ;;  %v753_v33 = vld [vmem:[%s1700_s3 + $0x170] sm:$0xff] }
  0x2d   :  { %v1112_v32 = vpack.c.bf16 %v722_v30, %v721_v29  ;;  %v754_v34 = vld [vmem:[%s1700_s3 + $0x178] sm:$0xff] }
  0x2f   :  { %548 = vmatpush1.bf16.msra.mxu0 %v1206_v37  ;;  %601 = vmatpush1.bf16.msra.mxu1 %v1207_v39  ;;  %v743_v37 = vld [vmem:[%s1700_s3 + $0x120] sm:$0xff] }
  0x30   :  { %549 = vmatprep.subr.bf16.mxu0 %v1208_v40  ;;  %602 = vmatprep.subr.bf16.mxu1 %v1210_v41  ;;  %v1124_v39 = vpack.c.bf16 %v744_v38, %v743_v37  ;;  %v729_v40 = vld [vmem:[%s1700_s3 + $0xb0] sm:$0xff]  ;;  %v730_v41 = vld [vmem:[%s1700_s3 + $0xb8] sm:$0xff] }
  0x33   :  { %550 = vmatpush1.bf16.msra.mxu0 %v1212_v42  ;;  %603 = vmatpush1.bf16.msra.mxu1 %v1213_v43  ;;  %v761_v42 = vld [vmem:[%s1700_s3 + $0x1b0] sm:$0xff]  ;;  %v1094_v43 = vpack.c.bf16 %v730_v41, %v729_v40  ;;  %v217_v40 = vld [vmem:[%s1701_s2] sm:$0xf] }
  0x34   :  { %551 = vmatprep.subr.bf16.mxu0 %v1215_v44  ;;  %604 = vmatprep.subr.bf16.mxu1 %v1217_v45  ;;  %v762_v44 = vld [vmem:[%s1700_s3 + $0x1b8] sm:$0xff]  ;;  %v713_v45 = vld [vmem:[%s1700_s3 + $0x30] sm:$0xff] }
  0x37   :  { %552 = vmatpush1.bf16.msra.mxu0 %v1219_v46  ;;  %605 = vmatpush1.bf16.msra.mxu1 %v1220_v47  ;;  %v714_v46 = vld [vmem:[%s1700_s3 + $0x38] sm:$0xff]  ;;  %v1126_v47 = vpack.c.bf16 %v762_v44, %v761_v42 }
  0x38   :  { %553 = vmatprep.subr.bf16.mxu0 %v1221_v48  ;;  %606 = vmatprep.subr.bf16.mxu1 %v1223_v49  ;;  %v1096_v48 = vpack.c.bf16 %v714_v46, %v713_v45  ;;  %v745_v49 = vld [vmem:[%s1700_s3 + $0x130] sm:$0xff] }
  0x39   :  { %v1128_v51 = vpack.c.bf16 %v746_v50, %v745_v49 }
  0x3b   :  { %554 = vmatpush1.bf16.msra.mxu0 %v1225_v52  ;;  %607 = vmatpush1.bf16.msra.mxu1 %v1226_v53  ;;  %v731_v52 = vld [vmem:[%s1700_s3 + $0xc0] sm:$0xff]  ;;  %v732_v53 = vld [vmem:[%s1700_s3 + $0xc8] sm:$0xff] }
  0x3c   :  { %1005 = vmatprep.subr.msk.bf16.mxu0 %vm516_vm7, %v1002_v54  ;;  %1008 = vmatprep.subr.msk.bf16.mxu1 %vm516_vm7, %v1004_v56  ;;  %v763_v54 = vld [vmem:[%s1700_s3 + $0x1c0] sm:$0xff]  ;;  %v1098_v55 = vpack.c.bf16 %v732_v53, %v731_v52  ;;  %v764_v56 = vld [vmem:[%s1700_s3 + $0x1c8] sm:$0xff] }
  0x3f   :  { %556 = vmatpush1.bf16.msra.mxu0 %v518_v58  ;;  %609 = vmatpush1.bf16.msra.mxu1 %v524_v59  ;;  %v716_v58 = vld [vmem:[%s1700_s3 + $0x48] sm:$0xff]  ;;  %v1130_v59 = vpack.c.bf16 %v764_v56, %v763_v54 }
  0x40   :  { %1083 = vmatprep.subr.bf16.mxu0 %v1082_v7  ;;  %1115 = vmatprep.subr.bf16.mxu1 %v1114_v11  ;;  %v1136_v11 = vpack.c.bf16 %v750_v10, %v749_v9 }
  0x7f   :  { %v104_v60 = vpop.permute.xlu0 %103 }
  0x80   :  { %110 = vst.msk [vmem:[#allocation2] sm:$0xff] %vm109_vm8, %v104_v60 }
  0x81   :  { %112 = vst.msk [vmem:[#allocation2 + $0x8] sm:$0xff] %vm111_vm9, %v104_v60  ;;  %v1100_v60 = vpack.c.bf16 %v716_v58, %v715_v57 }
  0x83   :  { %v151_v61 = vpop.permute.xlu0 %150 }
  0x84   :  { %157 = vst.msk [vmem:[#allocation2 + $0x8] sm:$0xff] %vm156_vm10, %v151_v61  ;;  %v106_v62 = vpop.permute.xlu1 %105  ;;  %v747_v61 = vld [vmem:[%s1700_s3 + $0x140] sm:$0xff] }
  0x85   :  { %113 = vst.msk [vmem:[#allocation2 + $0x10] sm:$0xff] %vm109_vm8, %v106_v62 }
  0x86   :  { %114 = vst.msk [vmem:[#allocation2 + $0x18] sm:$0xff] %vm111_vm9, %v106_v62  ;;  %v748_v62 = vld [vmem:[%s1700_s3 + $0x148] sm:$0xff] }
  0x87   :  { %v159_v1 = vld [vmem:[#allocation2] sm:$0xff] }
  0x88   :  { %v153_v63 = vpop.permute.xlu1 %152 }
  0x89   :  { %158 = vst.msk [vmem:[#allocation2 + $0x18] sm:$0xff] %vm156_vm10, %v153_v63  ;;  %v1132_v63 = vpack.c.bf16 %v748_v62, %v747_v61 }
  0x8b   :  { %v160_v0 = vld [vmem:[#allocation2 + $0x8] sm:$0xff] }
  0x8c   :  { %1006 = vmatprep.mubr.msk.bf16.mxu0 %vm509_vm11, %v160_v0  ;;  %1009 = vmatprep.mubr.msk.bf16.mxu1 %vm509_vm11, %v160_v0  ;;  %v161_v3 = vld [vmem:[#allocation2 + $0x10] sm:$0xff] }
  0x8d   :  { %562 = vmatmul.mubr.bf16.vlgmr.msra.gmra.mrb[0].mxu0 %v159_v1  ;;  %615 = vmatmul.mubr.bf16.vlgmr.msra.gmra.mrb[0].mxu1 %v159_v1  ;;  %v733_v0 = vld [vmem:[%s1700_s3 + $0xd0] sm:$0xff]  ;;  %v734_v1 = vld [vmem:[%s1700_s3 + $0xd8] sm:$0xff] }
  0x8e   :  { %1085 = vmatpush3.bf16.msra.mxu0 %v1084_v12  ;;  %1117 = vmatpush3.bf16.msra.mxu1 %v1116_v15  ;;  %v735_v12 = vld [vmem:[%s1700_s3 + $0xe0] sm:$0xff] }
  0x8f   :  { %1087 = vmatprep.subr.bf16.mxu0 %v1086_v19  ;;  %1119 = vmatprep.subr.bf16.mxu1 %v1118_v23  ;;  %v1106_v15 = vpack.c.bf16 %v736_v13, %v735_v12  ;;  %v1138_v19 = vpack.c.bf16 %v768_v16, %v767_v14  ;;  %v1140_v23 = vpack.c.bf16 %v752_v22, %v751_v21 }
  0x90   :  { %v162_v2 = vld [vmem:[#allocation2 + $0x18] sm:$0xff] }
  0x91   :  { %1007 = vmatprep.mubr.msk.bf16.mxu0 %vm509_vm11, %v162_v2  ;;  %1010 = vmatprep.mubr.msk.bf16.mxu1 %vm509_vm11, %v162_v2  ;;  %v765_v2 = vld [vmem:[%s1700_s3 + $0x1d0] sm:$0xff] }
  0x92   :  { %1089 = vmatpush3.bf16.msra.mxu0 %v1088_v24  ;;  %1121 = vmatpush3.bf16.msra.mxu1 %v1120_v27  ;;  %v1134_v7 = vpack.c.bf16 %v766_v4, %v765_v2  ;;  %v737_v24 = vld [vmem:[%s1700_s3 + $0xf0] sm:$0xff] }
  0x93   :  { %1091 = vmatprep.subr.bf16.mxu0 %v1090_v31  ;;  %1123 = vmatprep.subr.bf16.mxu1 %v1122_v35  ;;  %v1110_v27 = vpack.c.bf16 %v738_v25, %v737_v24  ;;  %v1142_v31 = vpack.c.bf16 %v770_v28, %v769_v26  ;;  %v1144_v35 = vpack.c.bf16 %v754_v34, %v753_v33 }
  0x95   :  { %572 = vmatmul.mubr.bf16.gmra.mrb[4].mxu0 %v161_v3  ;;  %625 = vmatmul.mubr.bf16.gmra.mrb[4].mxu1 %v161_v3  ;;  %v1102_v3 = vpack.c.bf16 %v734_v1, %v733_v0 }
  0x96   :  { %1093 = vmatpush3.bf16.msra.mxu0 %v1092_v36  ;;  %1125 = vmatpush3.bf16.msra.mxu1 %v1124_v39  ;;  %v219_v36 = vlaneseq }
  0x97   :  { %1095 = vmatprep.subr.bf16.mxu0 %v1094_v43  ;;  %1127 = vmatprep.subr.bf16.mxu1 %v1126_v47 }
  0x98   :  { %v220_v37 = vshrl.u32 %v219_v36, 7 }
  0x9a   :  { %1097 = vmatpush3.bf16.msra.mxu0 %v1096_v48  ;;  %1129 = vmatpush3.bf16.msra.mxu1 %v1128_v51  ;;  %v221_v38 = vsub.s32 0, %v220_v37  ;;  %v229_v39 = vsub.s32 2, %v220_v37  ;;  %v225_v41 = vsub.s32 1, %v220_v37  ;;  %v233_v42 = vsub.s32 3, %v220_v37 }
  0x9b   :  { %1099 = vmatprep.subr.bf16.mxu0 %v1098_v55  ;;  %1131 = vmatprep.subr.bf16.mxu1 %v1130_v59 }
  0x9c   :  { %v222_v43 = vrot.slane %v217_v40, %v221_v38  ;;  %v230_v44 = vrot.slane %v217_v40, %v229_v39  ;;  %v226_v45 = vrot.slane %v217_v40, %v225_v41  ;;  %v234_v46 = vrot.slane %v217_v40, %v233_v42 }
  0x9e   :  { %1101 = vmatpush3.bf16.msra.mxu0 %v1100_v60  ;;  %1133 = vmatpush3.bf16.msra.mxu1 %v1132_v63 }
  0x9f   :  { %1103 = vmatprep.subr.bf16.mxu0 %v1102_v3  ;;  %1135 = vmatprep.subr.bf16.mxu1 %v1134_v7 }
  0xa2   :  { %1105 = vmatpush3.bf16.msra.mxu0 %v1104_v8  ;;  %1137 = vmatpush3.bf16.msra.mxu1 %v1136_v11 }
  0xa3   :  { %1107 = vmatprep.subr.bf16.mxu0 %v1106_v15  ;;  %1139 = vmatprep.subr.bf16.mxu1 %v1138_v19 }
  0xa6   :  { %1109 = vmatpush3.bf16.msra.mxu0 %v1108_v20  ;;  %1141 = vmatpush3.bf16.msra.mxu1 %v1140_v23 }
  0xa7   :  { %1111 = vmatprep.subr.bf16.mxu0 %v1110_v27  ;;  %1143 = vmatprep.subr.bf16.mxu1 %v1142_v31 }
  0xaa   :  { %1113 = vmatpush3.bf16.msra.mxu0 %v1112_v32  ;;  %1145 = vmatpush3.bf16.msra.mxu1 %v1144_v35 }
 0x160   :  { %v563_v47 = vpop.f32.mrb[0].mxu0  ;;  %v616_v48 = vpop.f32.mrb[0].mxu1 }
 0x161   :  { %v564_v49 = vadd.f32 %v563_v47, %v222_v43  ;;  %v617_v50 = vadd.f32 %v616_v48, %v230_v44  ;;  %v565_v51 = vpop.f32.mrb[1].mxu0  ;;  %v618_v52 = vpop.f32.mrb[1].mxu1 }
 0x162   :  { %v566_v53 = vadd.f32 %v565_v51, %v226_v45  ;;  %v619_v54 = vadd.f32 %v618_v52, %v234_v46  ;;  %v567_v55 = vpop.f32.mrb[2].mxu0  ;;  %v620_v56 = vpop.f32.mrb[2].mxu1 }
 0x163   :  { %v568_v57 = vadd.f32 %v567_v55, %v222_v43  ;;  %v621_v58 = vadd.f32 %v620_v56, %v230_v44  ;;  %v569_v59 = vpop.f32.mrb[3].mxu0  ;;  %v622_v60 = vpop.f32.mrb[3].mxu1  ;;  %v635_v63 = vmax.f32 %v564_v49, 0.0  ;;  %v637_v0 = vmax.f32 %v617_v50, 0.0 }
 0x164   :  { %v570_v61 = vadd.f32 %v569_v59, %v226_v45  ;;  %v623_v62 = vadd.f32 %v622_v60, %v234_v46  ;;  %v636_v3 = vmax.f32 %v566_v53, 0.0  ;;  %v638_v4 = vmax.f32 %v619_v54, 0.0 }
 0x165   :  { %v639_v1 = vmax.f32 %v568_v57, 0.0  ;;  %v641_v2 = vmax.f32 %v621_v58, 0.0 }
 0x166   :  { %v640_v5 = vmax.f32 %v570_v61, 0.0  ;;  %v642_v6 = vmax.f32 %v623_v62, 0.0 }
 0x167   :  { %v651_v7 = vadd.f32 %v639_v1, %v635_v63  ;;  %v665_v8 = vadd.f32 %v641_v2, %v637_v0 }
 0x168   :  { %v658_v9 = vadd.f32 %v640_v5, %v636_v3  ;;  %v672_v10 = vadd.f32 %v642_v6, %v638_v4  ;;  %v573_v11 = vpop.f32.mrb[4].mxu0  ;;  %v626_v12 = vpop.f32.mrb[4].mxu1 }
 0x169   :  { %v652_v13 = vrot.slane %v651_v7, 4  ;;  %v666_v14 = vrot.slane %v665_v8, 4  ;;  %v575_v15 = vpop.f32.mrb[5].mxu0  ;;  %v628_v16 = vpop.f32.mrb[5].mxu1  ;;  %v574_v21 = vadd.f32 %v573_v11, %v222_v43  ;;  %v627_v22 = vadd.f32 %v626_v12, %v230_v44 }
 0x16a   :  { %v659_v17 = vrot.slane %v658_v9, 4  ;;  %v673_v18 = vrot.slane %v672_v10, 4  ;;  %v577_v19 = vpop.f32.mrb[6].mxu0  ;;  %v630_v20 = vpop.f32.mrb[6].mxu1  ;;  %v576_v25 = vadd.f32 %v575_v15, %v226_v45  ;;  %v629_v26 = vadd.f32 %v628_v16, %v234_v46 }
 0x16b   :  { %v579_v23 = vpop.f32.mrb[7].mxu0  ;;  %v632_v24 = vpop.f32.mrb[7].mxu1  ;;  %v653_v27 = vadd.f32 %v652_v13, %v651_v7  ;;  %v667_v28 = vadd.f32 %v666_v14, %v665_v8  ;;  %v578_v29 = vadd.f32 %v577_v19, %v222_v43  ;;  %v631_v30 = vadd.f32 %v630_v20, %v230_v44 }
 0x16c   :  { %v660_v31 = vadd.f32 %v659_v17, %v658_v9  ;;  %v674_v32 = vadd.f32 %v673_v18, %v672_v10  ;;  %v580_v33 = vadd.f32 %v579_v23, %v226_v45  ;;  %v633_v34 = vadd.f32 %v632_v24, %v234_v46 }
 0x16d   :  { %v643_v35 = vmax.f32 %v574_v21, 0.0  ;;  %v645_v36 = vmax.f32 %v627_v22, 0.0  ;;  %v647_v37 = vmax.f32 %v578_v29, 0.0  ;;  %v649_v38 = vmax.f32 %v631_v30, 0.0  ;;  %v1011_v29 = vld [vmem:[%s1702_s4] ss:$0 sm:$0xff] }
 0x16e   :  { %v644_v39 = vmax.f32 %v576_v25, 0.0  ;;  %v646_v40 = vmax.f32 %v629_v26, 0.0  ;;  %v648_v41 = vmax.f32 %v580_v33, 0.0  ;;  %v650_v42 = vmax.f32 %v633_v34, 0.0 }
 0x16f   :  { %v654_v47 = vrot.slane %v653_v27, 2  ;;  %v668_v48 = vrot.slane %v667_v28, 2  ;;  %v679_v49 = vadd.f32 %v647_v37, %v643_v35  ;;  %v693_v50 = vadd.f32 %v649_v38, %v645_v36 }
 0x170   :  { %v661_v51 = vrot.slane %v660_v31, 2  ;;  %v675_v52 = vrot.slane %v674_v32, 2  ;;  %v686_v43 = vadd.f32 %v648_v41, %v644_v39  ;;  %v700_v44 = vadd.f32 %v650_v42, %v646_v40 }
 0x171   :  { %v680_v53 = vrot.slane %v679_v49, 4  ;;  %v694_v54 = vrot.slane %v693_v50, 4  ;;  %v655_v55 = vadd.f32 %v654_v47, %v653_v27  ;;  %v669_v56 = vadd.f32 %v668_v48, %v667_v28 }
 0x172   :  { %v687_v45 = vrot.slane %v686_v43, 4  ;;  %v701_v46 = vrot.slane %v700_v44, 4  ;;  %v662_v59 = vadd.f32 %v661_v51, %v660_v31  ;;  %v676_v60 = vadd.f32 %v675_v52, %v674_v32 }
 0x173   :  { %v681_v57 = vadd.f32 %v680_v53, %v679_v49  ;;  %v695_v58 = vadd.f32 %v694_v54, %v693_v50  ;;  %v656_v3 = vrot.slane %v655_v55, 1  ;;  %v670_v4 = vrot.slane %v669_v56, 1 }
 0x174   :  { %v688_v61 = vadd.f32 %v687_v45, %v686_v43  ;;  %v702_v62 = vadd.f32 %v701_v46, %v700_v44  ;;  %v663_v9 = vrot.slane %v662_v59, 1  ;;  %v677_v10 = vrot.slane %v676_v60, 1 }
 0x175   :  { %v682_v63 = vrot.slane %v681_v57, 2  ;;  %v696_v0 = vrot.slane %v695_v58, 2  ;;  %v657_v15 = vadd.f32 %v656_v3, %v655_v55  ;;  %v671_v16 = vadd.f32 %v670_v4, %v669_v56 }
 0x176   :  { %v689_v1 = vrot.slane %v688_v61, 2  ;;  %v703_v2 = vrot.slane %v702_v62, 2  ;;  %v664_v19 = vadd.f32 %v663_v9, %v662_v59  ;;  %v678_v21 = vadd.f32 %v677_v10, %v676_v60 }
 0x177   :  { %v683_v5 = vadd.f32 %v682_v63, %v681_v57  ;;  %v697_v6 = vadd.f32 %v696_v0, %v695_v58 }
 0x178   :  { %v690_v7 = vadd.f32 %v689_v1, %v688_v61  ;;  %v704_v8 = vadd.f32 %v703_v2, %v702_v62 }
 0x179   :  { %v684_v11 = vrot.slane %v683_v5, 1  ;;  %v698_v12 = vrot.slane %v697_v6, 1 }
 0x17a   :  { %v691_v13 = vrot.slane %v690_v7, 1  ;;  %v705_v14 = vrot.slane %v704_v8, 1 }
 0x17b   :  { %v685_v17 = vadd.f32 %v684_v11, %v683_v5  ;;  %v699_v18 = vadd.f32 %v698_v12, %v697_v6 }
 0x17c   :  { %v692_v20 = vadd.f32 %v691_v13, %v690_v7  ;;  %v706_v22 = vadd.f32 %v705_v14, %v704_v8 }
 0x17d   :  { %v787_v23 = vsel %vm786_vm12, %v685_v17, %v657_v15  ;;  %v789_v24 = vsel %vm786_vm12, %v699_v18, %v671_v16 }
 0x17e   :  { %v788_v25 = vsel %vm786_vm12, %v692_v20, %v664_v19  ;;  %v790_v26 = vsel %vm786_vm12, %v706_v22, %v678_v21 }
 0x17f   :  { %859 = vmatprep.mubr.f32.mxu0 %v788_v25  ;;  %929 = vmatprep.mubr.f32.mxu1 %v790_v26 }
 0x180   :  { %860 = vmatmul.mubr.f32.vlgmr.msra.gmra.mrb[8].mxu0 %v787_v23  ;;  %930 = vmatmul.mubr.f32.vlgmr.msra.gmra.mrb[8].mxu1 %v789_v24 }
 0x253   :  { %v1044_v27 = vpop.f32.mrb[8].mxu0  ;;  %v1079_v28 = vpop.f32.mrb[8].mxu1 }
 0x254   :  { %v1045_v30 = vpop.f32.mrb[9].mxu0  ;;  %v1080_v31 = vpop.f32.mrb[9].mxu1 }
 0x255   :  { %v1046_v32 = vadd.f32 %v1045_v30, %v1044_v27  ;;  %v1081_v33 = vadd.f32 %v1080_v31, %v1079_v28 }
 0x257   :  { %v862_v34 = vadd.f32 %v1046_v32, %v1011_v29 }
 0x259   :  { %v932_v35 = vadd.f32 %v1081_v33, %v862_v34 }
 0x25b   :  { %936 = vst.msk [vmem:[%s1703_s5] sm:$0x3] %vm935_vm13, %v932_v35 }

</bundles_post_ra>
